<compile_context>
chip_gen: v7x
topology: tpu7x:2x2x1
jax: 0.10.0
libtpu: 0.0.40
codegen_flags: <defaults>
</compile_context>

<pallas_src>
import functools

import jax
import jax.numpy as jnp
from jax.experimental import pallas as pl
from jax.experimental.pallas import tpu as pltpu


def kd_nn_kernel(x_ref, w1_ref, b1_ref, w2_ref, b2_ref, w3_ref, b3_ref, o_ref):
    # x_ref: (in_size, TB) bf16 -- batch on the lane axis.
    x = x_ref[...]

    # fc1 + ReLU   (bf16 operands, f32 accumulation)
    h1 = jnp.dot(w1_ref[...], x, preferred_element_type=jnp.float32)      # (64, TB)
    h1 = jnp.maximum(h1 + b1_ref[...], 0.0)

    # fc2 + ReLU
    h2 = jnp.dot(w2_ref[...], h1.astype(w2_ref.dtype),
                 preferred_element_type=jnp.float32)                      # (32, TB)
    h2 = jnp.maximum(h2 + b2_ref[...], 0.0)

    # fc3 + softplus  (stable: log(1+exp(z)) = max(z,0) + log1p(exp(-|z|)))
    z = jnp.dot(w3_ref[...], h2.astype(w3_ref.dtype),
                preferred_element_type=jnp.float32)                       # (out, TB)
    z = z + b3_ref[...]
    sp = jnp.maximum(z, 0.0) + jnp.log1p(jnp.exp(-jnp.abs(z)))

    o_ref[...] = sp.astype(o_ref.dtype)


def _round_up(n, m):
    return ((n + m - 1) // m) * m


def _pick_block_batch(batch, in_size, out_size, block_batch):
    """Lane-axis batch tile: multiple of 128, VMEM-budgeted, >= 2 grid steps when large."""
    if batch <= 256:
        return batch  # single tile; block dim equals the full array dim so any size is legal
    # Double-buffered x tile (bf16) + out tile (f32) per lane column; keep under ~16 MiB
    # so it also fits v7x's 64 MiB VMEM / 32 MiB scoped default with headroom.
    per_col = 2 * (in_size * 2 + out_size * 4)
    vmem_cap = max(128, ((16 << 20) // per_col) // 128 * 128)
    # At least two grid steps so v7x's two TensorCores both get work.
    two_step = _round_up(pl.cdiv(batch, 2), 128)
    return max(128, min(block_batch, vmem_cap, two_step))


def kd_nn_forward(x, params, *, block_batch=8192, compute_dtype=jnp.bfloat16):
    """x: (batch, in_size) f32.  params: weights in (out, in) layout, biases (out, 1)."""
    w1, b1, w2, b2, w3, b3 = params
    batch, in_size = x.shape
    h1_dim, h2_dim, out_size = w1.shape[0], w2.shape[0], w3.shape[0]

    # One fused layout pass: put batch on the lane axis; the bf16 cast rides along with the
    # transpose (no standalone convert pass, no extra HBM round-trip for x).
    x_t = jnp.transpose(x).astype(compute_dtype)                          # (in_size, batch)
    w1c, w2c, w3c = (w.astype(compute_dtype) for w in (w1, w2, w3))

    tb = _pick_block_batch(batch, in_size, out_size, block_batch)
    num_tiles = pl.cdiv(batch, tb)  # ragged last tile handled by Pallas block clipping

    def const_spec(shape):
        ndim = len(shape)
        return pl.BlockSpec(shape, lambda i, _n=ndim: (0,) * _n)

    flops = 2 * batch * (in_size * h1_dim + h1_dim * h2_dim + h2_dim * out_size)
    bytes_accessed = (
        x_t.size * x_t.dtype.itemsize
        + sum(int(a.size) * a.dtype.itemsize for a in (w1c, b1, w2c, b2, w3c, b3))
        + batch * out_size * 4
    )

    out_t = pl.pallas_call(
        kd_nn_kernel,
        out_shape=jax.ShapeDtypeStruct((out_size, batch), jnp.float32),
        grid=(num_tiles,),
        in_specs=[
            pl.BlockSpec((in_size, tb), lambda i: (0, i)),
            const_spec(w1c.shape), const_spec(b1.shape),
            const_spec(w2c.shape), const_spec(b2.shape),
            const_spec(w3c.shape), const_spec(b3.shape),
        ],
        out_specs=pl.BlockSpec((out_size, tb), lambda i: (0, i)),
        compiler_params=pltpu.CompilerParams(
            dimension_semantics=("parallel",),
        ),
        cost_estimate=pl.CostEstimate(
            flops=int(flops),
            transcendentals=int(2 * batch * out_size),
            bytes_accessed=int(bytes_accessed),
        ),
    )(x_t, w1c, b1, w2c, b2, w3c, b3)

    return jnp.transpose(out_t)                                            # (batch, out_size)


def xavier_uniform(key, fan_in, fan_out, dtype=jnp.float32):
    # matches torch.nn.init.xavier_uniform_ (gain=1); returns torch (out, in) layout
    limit = jnp.sqrt(6.0 / (fan_in + fan_out))
    return jax.random.uniform(key, (fan_out, fan_in), dtype, -limit, limit)


def init_params(key, input_size, output_size):
    k1, k2, k3, kb1, kb2, kb3 = jax.random.split(key, 6)
    # weights in PyTorch (out, in) layout; biases (out, 1) broadcast over the batch lane axis
    w1 = xavier_uniform(k1, input_size, 64)
    w2 = xavier_uniform(k2, 64, 32)
    w3 = xavier_uniform(k3, 32, output_size)
    # PyTorch default Linear bias init: U(-1/sqrt(fan_in), 1/sqrt(fan_in))
    b1 = jax.random.uniform(kb1, (64, 1), jnp.float32,
                            -1.0 / jnp.sqrt(input_size), 1.0 / jnp.sqrt(input_size))
    b2 = jax.random.uniform(kb2, (32, 1), jnp.float32,
                            -1.0 / jnp.sqrt(64.0), 1.0 / jnp.sqrt(64.0))
    b3 = jax.random.uniform(kb3, (output_size, 1), jnp.float32,
                            -1.0 / jnp.sqrt(32.0), 1.0 / jnp.sqrt(32.0))
    return (w1, b1, w2, b2, w3, b3)


def reference_forward_f32(x, params):
    w1, b1, w2, b2, w3, b3 = params
    h1 = jax.nn.relu(x @ w1.T + b1.T)
    h2 = jax.nn.relu(h1 @ w2.T + b2.T)
    return jax.nn.softplus(h2 @ w3.T + b3.T)


def reference_forward_bf16(x, params, compute_dtype=jnp.bfloat16):
    # Emulates the kernel's exact math (bf16 operands, f32 accumulation, f32 epilogue).
    w1, b1, w2, b2, w3, b3 = params
    xt = jnp.transpose(x).astype(compute_dtype)
    w1d, w2d, w3d = (w.astype(compute_dtype) for w in (w1, w2, w3))
    h1 = jax.nn.relu(jnp.dot(w1d, xt, preferred_element_type=jnp.float32) + b1)
    h2 = jax.nn.relu(jnp.dot(w2d, h1.astype(compute_dtype),
                             preferred_element_type=jnp.float32) + b2)
    z = jnp.dot(w3d, h2.astype(compute_dtype), preferred_element_type=jnp.float32) + b3
    return jnp.transpose(jax.nn.softplus(z))


if __name__ == "__main__":
    key = jax.random.PRNGKey(0)
    k_x, k_p = jax.random.split(key)

    batch = 8
    input_size = 16
    output_size = 4

    x = jax.random.normal(k_x, (batch, input_size), dtype=jnp.float32)
    params = init_params(k_p, input_size, output_size)

    out = kd_nn_forward(x, params)
    out = jax.block_until_ready(out)
    assert out.shape == (batch, output_size)

    # Exact-semantics check vs a reference applying the same bf16/f32 mixed precision.
    ref_bf16 = reference_forward_bf16(x, params)
    assert jnp.allclose(out, ref_bf16, atol=1e-4, rtol=1e-4), "mismatch vs bf16 reference"

    # Sanity check vs the pure-f32 PyTorch-equivalent forward (looser tolerance for bf16).
    ref_f32 = reference_forward_f32(x, params)
    assert jnp.allclose(out, ref_f32, atol=5e-2, rtol=5e-2), "mismatch vs f32 reference"

    print("KERNEL_OK")
</pallas_src>

<mosaic_0001>
module attributes {stable_mosaic.version = 11 : i64} {
  func.func @kd_nn_kernel(%arg0: i32, %arg1: memref<16x8xbf16, #tpu.memory_space<vmem>>, %arg2: memref<64x16xbf16, #tpu.memory_space<vmem>>, %arg3: memref<64x1xf32, #tpu.memory_space<vmem>>, %arg4: memref<32x64xbf16, #tpu.memory_space<vmem>>, %arg5: memref<32x1xf32, #tpu.memory_space<vmem>>, %arg6: memref<4x32xbf16, #tpu.memory_space<vmem>>, %arg7: memref<4x1xf32, #tpu.memory_space<vmem>>, %arg8: memref<4x8xf32, #tpu.memory_space<vmem>>) attributes {dimension_semantics = [#tpu.dimension_semantics<parallel>], iteration_bounds = array<i64: 1>, scalar_prefetch = 0 : i64, scratch_operands = 0 : i64, tpu.core_type = #tpu.core_type<tc>, window_params = [{transform_indices = @transform_0, window_bounds = array<i64: 16, 8>}, {pipeline_mode = #tpu.pipeline_mode<synchronous>, transform_indices = @transform_1, window_bounds = array<i64: 64, 16>}, {pipeline_mode = #tpu.pipeline_mode<synchronous>, transform_indices = @transform_2, window_bounds = array<i64: 64, 1>}, {pipeline_mode = #tpu.pipeline_mode<synchronous>, transform_indices = @transform_3, window_bounds = array<i64: 32, 64>}, {pipeline_mode = #tpu.pipeline_mode<synchronous>, transform_indices = @transform_4, window_bounds = array<i64: 32, 1>}, {pipeline_mode = #tpu.pipeline_mode<synchronous>, transform_indices = @transform_5, window_bounds = array<i64: 4, 32>}, {pipeline_mode = #tpu.pipeline_mode<synchronous>, transform_indices = @transform_6, window_bounds = array<i64: 4, 1>}, {transform_indices = @transform_7, window_bounds = array<i64: 4, 8>}]} {
    %c0 = arith.constant 0 : index
    %c0_0 = arith.constant 0 : index
    %0 = vector.load %arg1[%c0, %c0_0] : memref<16x8xbf16, #tpu.memory_space<vmem>>, vector<16x8xbf16>
    %c0_1 = arith.constant 0 : index
    %c0_2 = arith.constant 0 : index
    %1 = vector.load %arg2[%c0_1, %c0_2] : memref<64x16xbf16, #tpu.memory_space<vmem>>, vector<64x16xbf16>
    %cst = arith.constant dense<0.000000e+00> : vector<64x8xf32>
    %2 = tpu.matmul %1, %0, %cst {dimension_numbers = #tpu.dot_dimension_numbers<[1], [0], [0], [1], [0, 0, 1, 1], [], []>} : vector<64x16xbf16>, vector<16x8xbf16>, vector<64x8xf32> -> vector<64x8xf32>
    %c0_3 = arith.constant 0 : index
    %c0_4 = arith.constant 0 : index
    %3 = vector.load %arg3[%c0_3, %c0_4] : memref<64x1xf32, #tpu.memory_space<vmem>>, vector<64x1xf32>
    %4 = vector.broadcast %3 : vector<64x1xf32> to vector<64x8xf32>
    %5 = arith.addf %2, %4 : vector<64x8xf32>
    %cst_5 = arith.constant 0.000000e+00 : f32
    %6 = vector.broadcast %cst_5 : f32 to vector<64x8xf32>
    %7 = arith.maximumf %5, %6 : vector<64x8xf32>
    %c0_6 = arith.constant 0 : index
    %c0_7 = arith.constant 0 : index
    %8 = vector.load %arg4[%c0_6, %c0_7] : memref<32x64xbf16, #tpu.memory_space<vmem>>, vector<32x64xbf16>
    %9 = arith.truncf %7 : vector<64x8xf32> to vector<64x8xbf16>
    %cst_8 = arith.constant dense<0.000000e+00> : vector<32x8xf32>
    %10 = tpu.matmul %8, %9, %cst_8 {dimension_numbers = #tpu.dot_dimension_numbers<[1], [0], [0], [1], [0, 0, 1, 1], [], []>} : vector<32x64xbf16>, vector<64x8xbf16>, vector<32x8xf32> -> vector<32x8xf32>
    %c0_9 = arith.constant 0 : index
    %c0_10 = arith.constant 0 : index
    %11 = vector.load %arg5[%c0_9, %c0_10] : memref<32x1xf32, #tpu.memory_space<vmem>>, vector<32x1xf32>
    %12 = vector.broadcast %11 : vector<32x1xf32> to vector<32x8xf32>
    %13 = arith.addf %10, %12 : vector<32x8xf32>
    %cst_11 = arith.constant 0.000000e+00 : f32
    %14 = vector.broadcast %cst_11 : f32 to vector<32x8xf32>
    %15 = arith.maximumf %13, %14 : vector<32x8xf32>
    %c0_12 = arith.constant 0 : index
    %c0_13 = arith.constant 0 : index
    %16 = vector.load %arg6[%c0_12, %c0_13] : memref<4x32xbf16, #tpu.memory_space<vmem>>, vector<4x32xbf16>
    %17 = arith.truncf %15 : vector<32x8xf32> to vector<32x8xbf16>
    %cst_14 = arith.constant dense<0.000000e+00> : vector<4x8xf32>
    %18 = tpu.matmul %16, %17, %cst_14 {dimension_numbers = #tpu.dot_dimension_numbers<[1], [0], [0], [1], [0, 0, 1, 1], [], []>} : vector<4x32xbf16>, vector<32x8xbf16>, vector<4x8xf32> -> vector<4x8xf32>
    %c0_15 = arith.constant 0 : index
    %c0_16 = arith.constant 0 : index
    %19 = vector.load %arg7[%c0_15, %c0_16] : memref<4x1xf32, #tpu.memory_space<vmem>>, vector<4x1xf32>
    %20 = vector.broadcast %19 : vector<4x1xf32> to vector<4x8xf32>
    %21 = arith.addf %18, %20 : vector<4x8xf32>
    %cst_17 = arith.constant 0.000000e+00 : f32
    %22 = vector.broadcast %cst_17 : f32 to vector<4x8xf32>
    %23 = arith.maximumf %21, %22 : vector<4x8xf32>
    %24 = math.absf %21 : vector<4x8xf32>
    %cst_18 = arith.constant 0.000000e+00 : f32
    %25 = vector.broadcast %cst_18 : f32 to vector<4x8xf32>
    %26 = arith.subf %25, %24 : vector<4x8xf32>
    %27 = math.exp %26 : vector<4x8xf32>
    %28 = math.log1p %27 : vector<4x8xf32>
    %29 = arith.addf %23, %28 : vector<4x8xf32>
    %c0_19 = arith.constant 0 : index
    %c0_20 = arith.constant 0 : index
    %30 = vector.load %arg8[%c0_19, %c0_20] : memref<4x8xf32, #tpu.memory_space<vmem>>, vector<4x8xf32>
    tpu.vector_store %arg8[%c0_19, %c0_20], %29 {strides = array<i32>} : memref<4x8xf32, #tpu.memory_space<vmem>>, vector<4x8xf32>,
    return
  }
  func.func @transform_0(%arg0: i32) -> (i32, i32) {
    %c0_i32 = arith.constant 0 : i32
    %c0_i32_0 = arith.constant 0 : i32
    return %c0_i32, %arg0 : i32, i32
  }
  func.func @transform_1(%arg0: i32) -> (i32, i32) {
    %c0_i32 = arith.constant 0 : i32
    %c0_i32_0 = arith.constant 0 : i32
    %c0_i32_1 = arith.constant 0 : i32
    return %c0_i32, %c0_i32_0 : i32, i32
  }
  func.func @transform_2(%arg0: i32) -> (i32, i32) {
    %c0_i32 = arith.constant 0 : i32
    %c0_i32_0 = arith.constant 0 : i32
    %c0_i32_1 = arith.constant 0 : i32
    return %c0_i32, %c0_i32_0 : i32, i32
  }
  func.func @transform_3(%arg0: i32) -> (i32, i32) {
    %c0_i32 = arith.constant 0 : i32
    %c0_i32_0 = arith.constant 0 : i32
    %c0_i32_1 = arith.constant 0 : i32
    return %c0_i32, %c0_i32_0 : i32, i32
  }
  func.func @transform_4(%arg0: i32) -> (i32, i32) {
    %c0_i32 = arith.constant 0 : i32
    %c0_i32_0 = arith.constant 0 : i32
    %c0_i32_1 = arith.constant 0 : i32
    return %c0_i32, %c0_i32_0 : i32, i32
  }
  func.func @transform_5(%arg0: i32) -> (i32, i32) {
    %c0_i32 = arith.constant 0 : i32
    %c0_i32_0 = arith.constant 0 : i32
    %c0_i32_1 = arith.constant 0 : i32
    return %c0_i32, %c0_i32_0 : i32, i32
  }
  func.func @transform_6(%arg0: i32) -> (i32, i32) {
    %c0_i32 = arith.constant 0 : i32
    %c0_i32_0 = arith.constant 0 : i32
    %c0_i32_1 = arith.constant 0 : i32
    return %c0_i32, %c0_i32_0 : i32, i32
  }
  func.func @transform_7(%arg0: i32) -> (i32, i32) {
    %c0_i32 = arith.constant 0 : i32
    %c0_i32_0 = arith.constant 0 : i32
    return %c0_i32, %arg0 : i32, i32
  }
}

</mosaic_0001>

<bundles_post_ra>
// kernel: tpu_custom_call.1
= control target key start
LH: loop header
LB: loop body
LE: loop exit
PB: predicated region body
PF: predicated region fallthrough
CT: control target
= control target key end

     0   :  { %vm112_vm0 = vcmask 130048   ;;  %v483_v3 = vmov 0   ;;  %s608_s0 = inlined_call_operand.vmem [shape: bf16[16,8], index: 0, kind: input, shape index: {}]   ;;  %s609_s1 = inlined_call_operand.vmem [shape: bf16[64,16], index: 1, kind: input, shape index: {}]   ;;  %s610_s2 = inlined_call_operand.vmem [shape: f32[64,1], index: 2, kind: input, shape index: {}]   ;;  %s611_s3 = inlined_call_operand.vmem [shape: bf16[32,64], index: 3, kind: input, shape index: {}]   ;;  %s612_s4 = inlined_call_operand.vmem [shape: f32[32,1], index: 4, kind: input, shape index: {}]   ;;  %s613_s5 = inlined_call_operand.vmem [shape: bf16[4,32], index: 5, kind: input, shape index: {}]   ;;  %s614_s6 = inlined_call_operand.vmem [shape: f32[4,1], index: 6, kind: input, shape index: {}]   ;;  %s615_s7 = inlined_call_operand.hbm [shape: f32[4,8], index: 7, kind: output, shape index: {}]  }
   0x1   :  { %v448_v0 = vld [vmem:[%s608_s0] sm:$0xff]   ;;  %v450_v2 = vld [vmem:[%s609_s1 + $0x8] sm:$0xff]   ;;  %446 = vset.pattern.permute.xlu0 %v483_v3  ;;  %v451_v4 = vld [vmem:[%s609_s1 + $0x10] sm:$0xff]   ;;  %447 = vset.pattern.permute.xlu1 %v483_v3 }
   0x2   :  { %v449_v1 = vld [vmem:[%s609_s1] sm:$0xff]   ;;  %412 = vmatprep.subr.bf16.mxu0 %v448_v0  ;;  %v40_v6 = vld [vmem:[%s610_s2 + $0x10] sm:$0xff]  ;;  %v39_v7 = vld [vmem:[%s610_s2 + $0x8] sm:$0xff] }
   0x3   :  { %413 = vmatpush3.bf16.msra.mxu0 %v448_v0  ;;  %414 = vmatprep.mubr.msk.bf16.mxu0 %vm112_vm0, %v449_v1  ;;  %v38_v5 = vld [vmem:[%s610_s2] sm:$0xff]  ;;  %v41_v8 = vld [vmem:[%s610_s2 + $0x18] sm:$0xff] }
   0x4   :  { %48 = vperm.xlu0 %446, %v38_v5   ;;  %58 = vperm.xlu1 %447, %v40_v6   ;;  %v452_v9 = vld [vmem:[%s609_s1 + $0x18] sm:$0xff]  }
   0x6   :  { %415 = vmatmul.mubr.msk.bf16.vlgmr.msra.gmra.mrb[0].mxu0 %vm112_vm0, %v450_v2 }
   0x7   :  { %418 = vmatprep.mubr.msk.bf16.mxu0 %vm112_vm0, %v451_v4 }
   0x8   :  { %53 = vperm.xlu0 %446, %v39_v7  }
   0x9   :  { %12 = vsyncpa [#allocation3], 0  ;;  %v42_v10 = vld [vmem:[%s610_s2 + $0x20] sm:$0xff]  ;;  %63 = vperm.xlu1 %447, %v41_v8   ;;  %v43_v11 = vld [vmem:[%s610_s2 + $0x28] sm:$0xff]  ;;  %vm240_vm1 = vcmask 523264   ;;  %v484_v57 = vmov 0.0  }
   0xa   :  { %v44_v12 = vld [vmem:[%s610_s2 + $0x30] sm:$0xff]  ;;  %v45_v13 = vld [vmem:[%s610_s2 + $0x38] sm:$0xff]  ;;  %v206_v14 = vld [vmem:[%s612_s4] sm:$0xff]  ;;  %434 = vmatprep.subr.bf16.mxu0 %v484_v57  ;;  %vm485_vm2 = vmmov 0   ;;  %vm309_vm3 = vcmask 261120   ;;  %vm368_vm5 = vcmask 60416  }
   0xb   :  { %v207_v15 = vld [vmem:[%s612_s4 + $0x8] sm:$0xff]  ;;  %v208_v16 = vld [vmem:[%s612_s4 + $0x10] sm:$0xff]  ;;  %v209_v17 = vld [vmem:[%s612_s4 + $0x18] sm:$0xff] }
   0xc   :  { %68 = vperm.xlu0 %446, %v42_v10   ;;  %v303_v18 = vld [vmem:[%s614_s6] sm:$0xf]  ;;  %v454_v56 = vld [vmem:[%s611_s3 + $0x8] sm:$0xff]  }
   0xd   :  { %73 = vperm.xlu1 %447, %v43_v11   ;;  %v453_v19 = vld [vmem:[%s611_s3] sm:$0xff]  }
   0xe   :  { %419 = vmatmul.mubr.msk.bf16.gmra.mrb[4].mxu0 %vm112_vm0, %v452_v9  ;;  %430 = vmatprep.mubr.msk.bf16.mxu1 %vm240_vm1, %v453_v19 }
   0xf   :  { %438 = vmatprep.mubr.msk.bf16.mxu0 %vm485_vm2, %v484_v57 }
  0x10   :  { %78 = vperm.xlu0 %446, %v44_v12   ;;  %v300_v12 = vld [vmem:[%s613_s5] sm:$0x3]  ;;  %s486_s5 = smov [#allocation2]  }
  0x11   :  { %83 = vperm.xlu1 %447, %v45_v13   ;;  %s376_s13 = sshll.u32 %s486_s5, 4  ;;  %s377_s13 = int_to_ptr.vmem [resolvable:$true] %s376_s13 }
  0x12   :  { %s459_s14 = scalar_lea.vmem %s377_s13, 64  ;;  %p464_p1 = scmp.lt.s32.totalorder %s377_s13, %s377_s13 }
  0x13   :  { %p460_p0 = scmp.ne.s32.totalorder %s377_s13, %s459_s14  ;;  %p465_p2 = scmp.lt.s32.totalorder %s459_s14, %s459_s14 }
  0x14   :  { %212 = vperm.xlu0 %446, %v206_v14  }
  0x15   :  { %217 = vperm.xlu1 %447, %v207_v15   ;;  %p466_p3 = por %p465_p2, %p464_p1 }
  0x17   :  { %p467_p4 = pnand %p466_p3, %p460_p0 }
  0x18   :  { %222 = vperm.xlu0 %446, %v208_v16  }
  0x19   :  { %227 = vperm.xlu1 %447, %v209_v17  }
  0x1c   :  { %306 = vperm.xlu0 %446, %v303_v18  }
  0x83   :  { %v49_v20 = vpop.permute.xlu0 %48  ;;  %v59_v21 = vpop.permute.xlu1 %58 }
  0x87   :  { %v54_v22 = vpop.permute.xlu0 %53 }
  0x88   :  { %v64_v23 = vpop.permute.xlu1 %63 }
  0x8b   :  { %v69_v27 = vpop.permute.xlu0 %68 }
  0x8c   :  { %v74_v32 = vpop.permute.xlu1 %73 }
  0x8f   :  { %v79_v39 = vpop.permute.xlu0 %78 }
  0x90   :  { %v84_v44 = vpop.permute.xlu1 %83 }
  0x93   :  { %v213_v58 = vpop.permute.xlu0 %212 }
  0x94   :  { %v218_v59 = vpop.permute.xlu1 %217 }
  0x97   :  { %v223_v60 = vpop.permute.xlu0 %222 }
  0x98   :  { %v228_v0 = vpop.permute.xlu1 %227 }
  0x9b   :  { %v307_v13 = vpop.permute.xlu0 %306 }
  0xd9   :  { %v416_v24 = vpop.f32.mrb[0].mxu0 }
  0xda   :  { %v168_v25 = vadd.f32 %v416_v24, %v59_v21  ;;  %v159_v26 = vpop.f32.mrb[1].mxu0 }
  0xdb   :  { %v160_v28 = vadd.f32 %v159_v26, %v49_v20  ;;  %v417_v29 = vpop.f32.mrb[2].mxu0 }
  0xdc   :  { %v171_v30 = vadd.f32 %v417_v29, %v64_v23  ;;  %v162_v31 = vpop.f32.mrb[3].mxu0  ;;  %v192_v34 = vmax.f32 %v168_v25, 0.0 }
  0xdd   :  { %v163_v33 = vadd.f32 %v162_v31, %v54_v22  ;;  %v190_v36 = vmax.f32 %v160_v28, 0.0 }
  0xde   :  { %v193_v35 = vmax.f32 %v171_v30, 0.0 }
  0xdf   :  { %v191_v37 = vmax.f32 %v163_v33, 0.0 }
  0xe0   :  { %v203_v38 = vpack.c.bf16 %v193_v35, %v192_v34 }
  0xe1   :  { %v420_v40 = vpop.f32.mrb[4].mxu0  ;;  %v202_v41 = vpack.c.bf16 %v191_v37, %v190_v36 }
  0xe2   :  { %v184_v42 = vadd.f32 %v420_v40, %v79_v39  ;;  %v175_v43 = vpop.f32.mrb[5].mxu0 }
  0xe3   :  { %v176_v45 = vadd.f32 %v175_v43, %v69_v27  ;;  %v421_v46 = vpop.f32.mrb[6].mxu0  ;;  %422 = vmatprep.subr.bf16.mxu1 %v202_v41 }
  0xe4   :  { %v187_v47 = vadd.f32 %v421_v46, %v84_v44  ;;  %v178_v48 = vpop.f32.mrb[7].mxu0  ;;  %423 = vmatpush3.bf16.msra.mxu1 %v202_v41  ;;  %v196_v50 = vmax.f32 %v184_v42, 0.0 }
  0xe5   :  { %v179_v49 = vadd.f32 %v178_v48, %v74_v32  ;;  %424 = vmatprep.subr.bf16.mxu1 %v203_v38  ;;  %v194_v52 = vmax.f32 %v176_v45, 0.0 }
  0xe6   :  { %v197_v51 = vmax.f32 %v187_v47, 0.0 }
  0xe7   :  { %v195_v53 = vmax.f32 %v179_v49, 0.0 }
  0xe8   :  { %v205_v54 = vpack.c.bf16 %v197_v51, %v196_v50  ;;  %425 = vmatpush3.bf16.msra.mxu1 %v203_v38 }
  0xe9   :  { %v204_v55 = vpack.c.bf16 %v195_v53, %v194_v52 }
  0xeb   :  { %426 = vmatprep.subr.bf16.mxu1 %v204_v55 }
  0xec   :  { %427 = vmatpush3.bf16.msra.mxu1 %v204_v55 }
  0xed   :  { %428 = vmatprep.subr.bf16.mxu1 %v205_v54 }
  0xf0   :  { %429 = vmatpush3.bf16.msra.mxu1 %v205_v54 }
  0xf3   :  { %431 = vmatmul.mubr.msk.bf16.vlgmr.msra.gmra.mrb[0].mxu1 %vm240_vm1, %v454_v56 }
 0x1c6   :  { %v432_v61 = vpop.f32.mrb[0].mxu1 }
 0x1c7   :  { %v290_v62 = vadd.f32 %v432_v61, %v223_v60  ;;  %v281_v63 = vpop.f32.mrb[1].mxu1 }
 0x1c8   :  { %v282_v1 = vadd.f32 %v281_v63, %v213_v58  ;;  %v433_v2 = vpop.f32.mrb[2].mxu1 }
 0x1c9   :  { %v293_v3 = vadd.f32 %v433_v2, %v228_v0  ;;  %v284_v4 = vpop.f32.mrb[3].mxu1  ;;  %v298_v6 = vmax.f32 %v290_v62, 0.0 }
 0x1ca   :  { %v285_v5 = vadd.f32 %v284_v4, %v218_v59  ;;  %v296_v8 = vmax.f32 %v282_v1, 0.0 }
 0x1cb   :  { %v299_v7 = vmax.f32 %v293_v3, 0.0 }
 0x1cc   :  { %v297_v9 = vmax.f32 %v285_v5, 0.0 }
 0x1cd   :  { %v302_v10 = vpack.c.bf16 %v299_v7, %v298_v6 }
 0x1ce   :  { %v301_v11 = vpack.c.bf16 %v297_v9, %v296_v8 }
 0x1d0   :  { %435 = vmatpush3.bf16.msra.mxu0 %v301_v11 }
 0x1d1   :  { %436 = vmatprep.subr.bf16.mxu0 %v484_v57 }
 0x1d4   :  { %437 = vmatpush3.bf16.msra.mxu0 %v302_v10 }
 0x1d7   :  { %439 = vmatmul.mubr.msk.bf16.vlgmr.msra.gmra.mrb[8].mxu0 %vm309_vm3, %v300_v12 }
 0x2aa   :  { %v347_v14 = vpop.f32.mrb[8].mxu0 }
 0x2ab   :  { %v348_v15 = vadd.f32 %v347_v14, %v307_v13  ;;  %v440_v16 = vpop.f32.mrb[9].mxu0 }
 0x2ac   :  { %v350_v17 = vpop.f32.mrb[10].mxu0 }
 0x2ad   :  { %v354_v18 = vand.u32 2147483647, %v348_v15  ;;  %v441_v19 = vpop.f32.mrb[11].mxu0  ;;  %v353_v30 = vmax.f32 %v348_v15, 0.0 }
 0x2af   :  { %v355_v20 = vsub.f32 0.0, %v354_v18 }
 0x2b1   :  { %v356_v21 = vmul.f32 1.442695, %v355_v20 }
 0x2b3   :  { %455 = vpow2.f32 %v356_v21 }
 0x2bd   :  { %v456_v22 = vpop.eup %455 }
 0x2be   :  { %v358_v23 = vadd.f32 1.0, %v456_v22  ;;  %v361_v24 = vmul.f32 -0.5, %v456_v22  ;;  %v364_v26 = vand.u32 2147483647, %v456_v22 }
 0x2c0   :  { %457 = vlog2.f32 %v358_v23  ;;  %v362_v25 = vadd.f32 1.0, %v361_v24  ;;  %vm365_vm4 = vcmp.lt.f32.partialorder %v364_v26, 0.0004427343 }
 0x2c2   :  { %v363_v29 = vmul.f32 %v456_v22, %v362_v25 }
 0x2ca   :  { %v458_v27 = vpop.eup %457 }
 0x2cb   :  { %v360_v28 = vmul.f32 0.6931472, %v458_v27 }
 0x2cd   :  { %v366_v31 = vsel %vm365_vm4, %v363_v29, %v360_v28 }
 0x2ce   :  { %v367_v32 = vadd.f32 %v366_v31, %v353_v30 }
 0x2d0   :  { %369 = vst.msk [vmem:[#allocation2] sm:$0xf] %vm368_vm5, %v367_v32 }
 0x2d1   :  { %470 = shalt.err (!%p467_p4)
}
 0x2d2   :  { %s471_s17 = scalar_lea.hbm %s615_s7, 64 }
 0x2d3   :  { %p472_p5 = scmp.ne.s32.totalorder %s615_s7, %s471_s17  ;;  %p475_p6 = scmp.lt.u32.totalorder %s471_s17, %s615_s7 }
 0x2d5   :  { %p477_p7 = pnand %p475_p6, %p472_p5 }
 0x2d7   :  { %480 = shalt.err (!%p477_p7)
}
 0x2d8   :  { %379 = dma.vmem_to_hbm [thread:$0]  %s377_s13, 64, %s615_s7, [#allocation3]  }
 0x2d9   :  { %481 = dma.done.wait [#allocation3], 64  }
 0x2da   :  { %482 = vsyncadd [#allocation3], 4294967232 }
 0x2db   :  { %383 = vsyncpa [#allocation3], 1 }

</bundles_post_ra>
